<compile_context>
chip_gen: v5e
topology: v5e:2x2
jax: 0.10.0
libtpu: 0.0.40
codegen_flags: <defaults>
</compile_context>

<pallas_src>
import functools
import math

import jax
import jax.numpy as jnp
from jax.experimental import pallas as pl
from jax.experimental.pallas import tpu as pltpu

IGNORE_LB = 255


def _round_up(x, m):
    return (x + m - 1) // m * m


def _ohem_ce_kernel(logits_ref, labels_ref, loss_ref, part_ref, *, th, ignore_lb):
    # logits_ref: (1, C, TP)  model dtype (f32 or bf16; upcast per-tile)
    # labels_ref: (1, 1, TP)  int32
    # loss_ref:   (1, 1, TP)  f32   (lane-dense output)
    # part_ref:   (1, 1, 8, 128) f32 per-tile partials (lane-dense output)
    logits = logits_ref[0].astype(jnp.float32)        # (C, TP)
    labels = labels_ref[0]                            # (1, TP)
    c, tp = logits.shape

    # numerically stable log-sum-exp over the class (sublane) axis
    m = jnp.max(logits, axis=0, keepdims=True)        # (1, TP)
    lse = m + jnp.log(jnp.sum(jnp.exp(logits - m), axis=0, keepdims=True))

    # pick the target-class logit via one-hot select (kept on the VPU — C is
    # tiny, an MXU matmul would be wasted here)
    class_ids = jax.lax.broadcasted_iota(jnp.int32, (c, tp), 0)
    onehot = class_ids == labels
    picked = jnp.sum(jnp.where(onehot, logits, 0.0), axis=0, keepdims=True)

    valid = labels != ignore_lb
    loss = jnp.where(valid, lse - picked, 0.0)        # 0 at ignored / padded px
    loss_ref[0] = loss

    # fused OHEM bookkeeping: per-tile valid count, hard count, hard-loss sum
    hard = jnp.logical_and(valid, loss > th)
    count_valid = jnp.sum(valid.astype(jnp.float32))
    count_hard = jnp.sum(hard.astype(jnp.float32))
    sum_hard = jnp.sum(jnp.where(hard, loss, 0.0))

    row = jax.lax.broadcasted_iota(jnp.int32, (8, 128), 0)
    part = jnp.where(
        row == 0, count_valid,
        jnp.where(row == 1, count_hard, jnp.where(row == 2, sum_hard, 0.0)))
    part_ref[0, 0] = part


def _per_pixel_ce_and_partials(logits_nchw, labels_nhw, *, thresh, ignore_lb, tile_p):
    N, C, H, W = logits_nchw.shape
    HW = H * W

    # pixels-in-lanes: NCHW is already contiguous as (N, C, H*W) — free reshape,
    # no dtype cast (bf16 passes straight through; kernel upcasts per-tile).
    logits_ncp = logits_nchw.reshape(N, C, HW)
    labels_n1p = labels_nhw.reshape(N, 1, HW).astype(jnp.int32)

    # pick a large lane-dense pixel tile (multiple of 128)
    tile = tile_p if HW >= tile_p else _round_up(HW, 128)
    # keep the (double-buffered) logits block comfortably inside scoped VMEM on
    # every generation (v7x has only 64 MiB total / 32 MiB default scoped)
    while C * tile * logits_ncp.dtype.itemsize > (4 << 20) and tile % 256 == 0:
        tile //= 2
    hwp = _round_up(HW, tile)
    # keep >= a handful of grid steps so v7x can shard across both TensorCores
    while N * (hwp // tile) < 4 and tile % 256 == 0 and tile > 128:
        tile //= 2

    pad = hwp - HW
    if pad:
        logits_ncp = jnp.pad(logits_ncp, ((0, 0), (0, 0), (0, pad)))
        labels_n1p = jnp.pad(labels_n1p, ((0, 0), (0, 0), (0, pad)),
                             constant_values=ignore_lb)

    n_tiles = hwp // tile
    th = float(-math.log(thresh))
    kernel = functools.partial(_ohem_ce_kernel, th=th, ignore_lb=ignore_lb)

    loss, parts = pl.pallas_call(
        kernel,
        out_shape=(
            jax.ShapeDtypeStruct((N, 1, hwp), jnp.float32),
            jax.ShapeDtypeStruct((N, n_tiles, 8, 128), jnp.float32),
        ),
        grid_spec=pltpu.PrefetchScalarGridSpec(
            num_scalar_prefetch=0,
            grid=(N, n_tiles),
            in_specs=[
                pl.BlockSpec((1, C, tile), lambda n, t: (n, 0, t)),
                pl.BlockSpec((1, 1, tile), lambda n, t: (n, 0, t)),
            ],
            out_specs=[
                pl.BlockSpec((1, 1, tile), lambda n, t: (n, 0, t)),
                pl.BlockSpec((1, 1, 8, 128), lambda n, t: (n, t, 0, 0)),
            ],
        ),
        compiler_params=pltpu.CompilerParams(
            dimension_semantics=("parallel", "parallel")),
    )(logits_ncp, labels_n1p)

    loss_px = loss[:, 0, :HW].reshape(-1)                    # [P], padding dropped
    count_valid = jnp.sum(parts[:, :, 0, 0].astype(jnp.int32))
    count_hard = jnp.sum(parts[:, :, 1, 0].astype(jnp.int32))
    sum_hard = jnp.sum(parts[:, :, 2, 0])
    return loss_px, count_valid, count_hard, sum_hard


@functools.partial(jax.jit, static_argnames=("thresh", "ignore_lb", "tile_p"))
def ohem_ce_loss(logits, labels, *, thresh=0.7, ignore_lb=IGNORE_LB, tile_p=8192):
    N, C, H, W = logits.shape
    P = N * H * W

    loss_px, count_valid, count_hard, sum_hard = _per_pixel_ce_and_partials(
        logits, labels, thresh=thresh, ignore_lb=ignore_lb, tile_p=tile_p)

    n_min = count_valid // 16

    # NOTE: when count_hard == 0 (and hence n_min == 0 selects this branch),
    # 0/0 = NaN deliberately matches torch.mean of an empty tensor.
    mean_hard = sum_hard / count_hard.astype(jnp.float32)

    # Fallback: mean of the top-n_min losses.  n_min <= P // 16 by construction,
    # so a static-k top_k (16x smaller than a full sort) is exact.  Ignored
    # pixels carry loss 0 (the minimum CE), so ties cannot change this sum.
    k = max(P // 16, 1)
    topk_vals, _ = jax.lax.top_k(loss_px, k)                 # descending
    csum = jnp.cumsum(topk_vals)
    idx = jnp.clip(n_min - 1, 0, k - 1)
    mean_topk = csum[idx] / jnp.maximum(n_min, 1).astype(jnp.float32)

    return jnp.where(count_hard < n_min, mean_topk, mean_hard)


if __name__ == "__main__":
    key = jax.random.PRNGKey(0)
    k1, k2, k3 = jax.random.split(key, 3)

    N, C, H, W = 2, 4, 16, 16  # NCHW, matching the PyTorch convention
    logits = jax.random.normal(k1, (N, C, H, W), dtype=jnp.float32)
    labels = jax.random.randint(k2, (N, H, W), 0, C, dtype=jnp.int32)
    # sprinkle some ignore_lb pixels
    ignore_mask = jax.random.uniform(k3, (N, H, W)) < 0.1
    labels = jnp.where(ignore_mask, IGNORE_LB, labels)

    out = ohem_ce_loss(logits, labels, thresh=0.7)
    jax.block_until_ready(out)
    print("KERNEL_OK")
</pallas_src>

<mosaic_0001>
module attributes {stable_mosaic.version = 11 : i64} {
  func.func @_ohem_ce_kernel(%arg0: i32, %arg1: i32, %arg2: memref<1x4x128xf32, #tpu.memory_space<vmem>>, %arg3: memref<1x1x128xi32, #tpu.memory_space<vmem>>, %arg4: memref<1x1x128xf32, #tpu.memory_space<vmem>>, %arg5: memref<1x1x8x128xf32, #tpu.memory_space<vmem>>) attributes {dimension_semantics = [#tpu.dimension_semantics<parallel>, #tpu.dimension_semantics<parallel>], iteration_bounds = array<i64: 2, 2>, scalar_prefetch = 0 : i64, scratch_operands = 0 : i64, tpu.core_type = #tpu.core_type<tc>, window_params = [{transform_indices = @transform_0, window_bounds = array<i64: 1, 4, 128>}, {transform_indices = @transform_1, window_bounds = array<i64: 1, 1, 128>}, {transform_indices = @transform_2, window_bounds = array<i64: 1, 1, 128>}, {transform_indices = @transform_3, window_bounds = array<i64: 1, 1, 8, 128>}]} {
    %c0 = arith.constant 0 : index
    %c0_0 = arith.constant 0 : index
    %c0_1 = arith.constant 0 : index
    %0 = vector.load %arg2[%c0, %c0_0, %c0_1] : memref<1x4x128xf32, #tpu.memory_space<vmem>>, vector<1x4x128xf32>
    %1 = vector.shape_cast %0 : vector<1x4x128xf32> to vector<4x128xf32>
    %c0_2 = arith.constant 0 : index
    %c0_3 = arith.constant 0 : index
    %c0_4 = arith.constant 0 : index
    %2 = vector.load %arg3[%c0_2, %c0_3, %c0_4] : memref<1x1x128xi32, #tpu.memory_space<vmem>>, vector<1x1x128xi32>
    %3 = vector.shape_cast %2 : vector<1x1x128xi32> to vector<1x128xi32>
    %cst = arith.constant dense<0xFF800000> : vector<128xf32>
    %4 = vector.multi_reduction <maximumf>, %1, %cst [0] : vector<4x128xf32> to vector<128xf32>
    %5 = vector.shape_cast %4 : vector<128xf32> to vector<1x128xf32>
    %6 = vector.broadcast %5 : vector<1x128xf32> to vector<4x128xf32>
    %7 = arith.subf %1, %6 : vector<4x128xf32>
    %8 = math.exp %7 : vector<4x128xf32>
    %cst_5 = arith.constant dense<0.000000e+00> : vector<128xf32>
    %9 = vector.multi_reduction <add>, %8, %cst_5 [0] : vector<4x128xf32> to vector<128xf32>
    %10 = vector.shape_cast %9 : vector<128xf32> to vector<1x128xf32>
    %11 = math.log %10 : vector<1x128xf32>
    %12 = arith.addf %5, %11 : vector<1x128xf32>
    %13 = tpu.iota {dimensions = array<i32: 0>} : vector<4x128xi32>
    %14 = vector.broadcast %3 : vector<1x128xi32> to vector<4x128xi32>
    %15 = arith.cmpi eq, %13, %14 : vector<4x128xi32>
    %cst_6 = arith.constant 0.000000e+00 : f32
    %16 = vector.broadcast %cst_6 : f32 to vector<4x128xf32>
    %17 = arith.select %15, %1, %16 : vector<4x128xi1>, vector<4x128xf32>
    %cst_7 = arith.constant dense<0.000000e+00> : vector<128xf32>
    %18 = vector.multi_reduction <add>, %17, %cst_7 [0] : vector<4x128xf32> to vector<128xf32>
    %19 = vector.shape_cast %18 : vector<128xf32> to vector<1x128xf32>
    %c255_i32 = arith.constant 255 : i32
    %20 = vector.broadcast %c255_i32 : i32 to vector<1x128xi32>
    %21 = arith.cmpi ne, %3, %20 : vector<1x128xi32>
    %22 = arith.subf %12, %19 : vector<1x128xf32>
    %cst_8 = arith.constant 0.000000e+00 : f32
    %23 = vector.broadcast %cst_8 : f32 to vector<1x128xf32>
    %24 = arith.select %21, %22, %23 : vector<1x128xi1>, vector<1x128xf32>
    %c0_9 = arith.constant 0 : index
    %c0_10 = arith.constant 0 : index
    %c0_11 = arith.constant 0 : index
    %25 = vector.load %arg4[%c0_9, %c0_10, %c0_11] : memref<1x1x128xf32, #tpu.memory_space<vmem>>, vector<1x1x128xf32>
    %26 = vector.shape_cast %25 : vector<1x1x128xf32> to vector<1x128xf32>
    %27 = vector.shape_cast %24 : vector<1x128xf32> to vector<1x1x128xf32>
    tpu.vector_store %arg4[%c0_9, %c0_10, %c0_11], %27 {strides = array<i32>} : memref<1x1x128xf32, #tpu.memory_space<vmem>>, vector<1x1x128xf32>,
    %cst_12 = arith.constant 0.356674939 : f32
    %28 = vector.broadcast %cst_12 : f32 to vector<1x128xf32>
    %29 = arith.cmpf ogt, %24, %28 : vector<1x128xf32>
    %30 = arith.andi %21, %29 : vector<1x128xi1>
    %31 = arith.extui %21 : vector<1x128xi1> to vector<1x128xi32>
    %32 = arith.sitofp %31 : vector<1x128xi32> to vector<1x128xf32>
    %33 = vector.shape_cast %32 : vector<1x128xf32> to vector<1x1x128xf32>
    %cst_13 = arith.constant dense<0.000000e+00> : vector<1xf32>
    %34 = vector.multi_reduction <add>, %33, %cst_13 [1, 2] : vector<1x1x128xf32> to vector<1xf32>
    %35 = vector.shape_cast %34 : vector<1xf32> to vector<1x1x1xf32>
    %36 = vector.extract %35[0, 0, 0] : f32 from vector<1x1x1xf32>
    %37 = arith.extui %30 : vector<1x128xi1> to vector<1x128xi32>
    %38 = arith.sitofp %37 : vector<1x128xi32> to vector<1x128xf32>
    %39 = vector.shape_cast %38 : vector<1x128xf32> to vector<1x1x128xf32>
    %cst_14 = arith.constant dense<0.000000e+00> : vector<1xf32>
    %40 = vector.multi_reduction <add>, %39, %cst_14 [1, 2] : vector<1x1x128xf32> to vector<1xf32>
    %41 = vector.shape_cast %40 : vector<1xf32> to vector<1x1x1xf32>
    %42 = vector.extract %41[0, 0, 0] : f32 from vector<1x1x1xf32>
    %cst_15 = arith.constant 0.000000e+00 : f32
    %43 = vector.broadcast %cst_15 : f32 to vector<1x128xf32>
    %44 = arith.select %30, %24, %43 : vector<1x128xi1>, vector<1x128xf32>
    %45 = vector.shape_cast %44 : vector<1x128xf32> to vector<1x1x128xf32>
    %cst_16 = arith.constant dense<0.000000e+00> : vector<1xf32>
    %46 = vector.multi_reduction <add>, %45, %cst_16 [1, 2] : vector<1x1x128xf32> to vector<1xf32>
    %47 = vector.shape_cast %46 : vector<1xf32> to vector<1x1x1xf32>
    %48 = vector.extract %47[0, 0, 0] : f32 from vector<1x1x1xf32>
    %49 = tpu.iota {dimensions = array<i32: 0>} : vector<8x128xi32>
    %c0_i32 = arith.constant 0 : i32
    %50 = vector.broadcast %c0_i32 : i32 to vector<8x128xi32>
    %51 = arith.cmpi eq, %49, %50 : vector<8x128xi32>
    %c1_i32 = arith.constant 1 : i32
    %52 = vector.broadcast %c1_i32 : i32 to vector<8x128xi32>
    %53 = arith.cmpi eq, %49, %52 : vector<8x128xi32>
    %c2_i32 = arith.constant 2 : i32
    %54 = vector.broadcast %c2_i32 : i32 to vector<8x128xi32>
    %55 = arith.cmpi eq, %49, %54 : vector<8x128xi32>
    %cst_17 = arith.constant 0.000000e+00 : f32
    %56 = vector.broadcast %48 : f32 to vector<8x128xf32>
    %57 = vector.broadcast %cst_17 : f32 to vector<8x128xf32>
    %58 = arith.select %55, %56, %57 : vector<8x128xi1>, vector<8x128xf32>
    %59 = vector.broadcast %42 : f32 to vector<8x128xf32>
    %60 = arith.select %53, %59, %58 : vector<8x128xi1>, vector<8x128xf32>
    %61 = vector.broadcast %36 : f32 to vector<8x128xf32>
    %62 = arith.select %51, %61, %60 : vector<8x128xi1>, vector<8x128xf32>
    %c0_18 = arith.constant 0 : index
    %c0_19 = arith.constant 0 : index
    %c0_20 = arith.constant 0 : index
    %c0_21 = arith.constant 0 : index
    %63 = vector.load %arg5[%c0_18, %c0_19, %c0_20, %c0_21] : memref<1x1x8x128xf32, #tpu.memory_space<vmem>>, vector<1x1x8x128xf32>
    %64 = vector.shape_cast %63 : vector<1x1x8x128xf32> to vector<8x128xf32>
    %65 = vector.shape_cast %62 : vector<8x128xf32> to vector<1x1x8x128xf32>
    tpu.vector_store %arg5[%c0_18, %c0_19, %c0_20, %c0_21], %65 {strides = array<i32>} : memref<1x1x8x128xf32, #tpu.memory_space<vmem>>, vector<1x1x8x128xf32>,
    return
  }
  func.func @transform_0(%arg0: i32, %arg1: i32) -> (i32, i32, i32) {
    %c0_i32 = arith.constant 0 : i32
    %c0_i32_0 = arith.constant 0 : i32
    return %arg0, %c0_i32, %arg1 : i32, i32, i32
  }
  func.func @transform_1(%arg0: i32, %arg1: i32) -> (i32, i32, i32) {
    %c0_i32 = arith.constant 0 : i32
    %c0_i32_0 = arith.constant 0 : i32
    return %arg0, %c0_i32, %arg1 : i32, i32, i32
  }
  func.func @transform_2(%arg0: i32, %arg1: i32) -> (i32, i32, i32) {
    %c0_i32 = arith.constant 0 : i32
    %c0_i32_0 = arith.constant 0 : i32
    return %arg0, %c0_i32, %arg1 : i32, i32, i32
  }
  func.func @transform_3(%arg0: i32, %arg1: i32) -> (i32, i32, i32, i32) {
    %c0_i32 = arith.constant 0 : i32
    %c0_i32_0 = arith.constant 0 : i32
    %c0_i32_1 = arith.constant 0 : i32
    return %arg0, %arg1, %c0_i32, %c0_i32_0 : i32, i32, i32, i32
  }
}

</mosaic_0001>

<bundles_post_ra>
// kernel: ohem_ce_loss.1
= control target key start
LH: loop header
LB: loop body
LE: loop exit
PB: predicated region body
PF: predicated region fallthrough
CT: control target
= control target key end

     0   :  { %s606_s12 = smov 0   ;;  %s608_s13 = smov 0   ;;  %s684_s0 = inlined_call_operand.vmem [shape: f32[2,4,256], index: 0, kind: input, shape index: {}]   ;;  %s685_s1 = inlined_call_operand.vmem [shape: s32[2,1,256], index: 1, kind: input, shape index: {}]   ;;  %s686_s2 = inlined_call_operand.vmem [shape: f32[2,1,256], index: 2, kind: output, shape index: {0}]   ;;  %s687_s3 = inlined_call_operand.vmem [shape: f32[2,2,8,128], index: 3, kind: output, shape index: {1}]  }
   0x1   :  { %s610_s14 = smov 0   ;;  %s612_s15 = smov 0  }
   0x2   :  { %s614_s16 = smov 0  }
   0x3 LB: > { %s23_s17 = sadd.s32 1, %s575_s14  ;;  %s26_s18 = sadd.s32 1, %s579_s15  ;;  %s583_s16 = sphi %s614_s16, %s14_s16   ;;  %s579_s15 = sphi %s612_s15, %s691_s15   ;;  %s575_s14 = sphi %s610_s14, %s690_s14   ;;  %s571_s13 = sphi %s608_s13, %s689_s13   ;;  %s567_s12 = sphi %s606_s12, %s688_s12  }
   0x4   : > { %p24_p0 = scmp.ge.s32.totalorder %s23_s17, 2  ;;  %p482_p1 = scmp.ge.s32.totalorder %s583_s16, 1 }
   0x5   : > { %p175_p2 = scmp.lt.s32.totalorder %s583_s16, 5 }
   0x6   : > { %s693_s17 = smov (%p24_p0, %s23_s17), 0  ;;  %s695_s18 = smov (!%p24_p0, %s26_s18), %s579_s15 }
   0x7   : > { %p176_p3 = pnand %p482_p1, %p175_p2  ;;  %p28_p4 = scmp.ge.s32.totalorder %s695_s18, 2 }
   0x8   : > { %p219_p5 = scmp.lt.s32.totalorder (!%p176_p3), %s571_s13, 1  ;;  %p221_p6 = scmp.lt.s32.totalorder (!%p176_p3), %s567_s12, 1 }
   0x9   : > { %s697_s18 = smov (%p28_p4, %s695_s18), 0  ;;  %179 = sbr.rel (%p176_p3) target bundleno = 259 (0x103), region = 28 }
   0xe   : > { %s699_s13 = smov (!%p219_p5, %s571_s13), 1  ;;  %s701_s12 = smov (!%p221_p6, %s567_s12), 1  ;;  %vm251_vm0 = vcmask 1043456   ;;  %vm292_vm1 = vcmask 1040384   ;;  %v585_v2 = vmov 0.0   ;;  %v272_v9 = vlaneseq }
   0xf   : > { %s483_s19 = sshll.u32 %s699_s13, 1 }
  0x10   : > { %s636_s20 = sadd.s32 %s483_s19, %s701_s12  ;;  %v649_v12 = vshrl.u32 %v272_v9, 7 }
  0x11   : > { %s233_s23 = scalar_lea.vmem %s685_s1, %s636_s20  ;;  %s484_s24 = sshll.u32 %s636_s20, 2 }
  0x12   : > { %v250_v0 = vld [vmem:[%s233_s23] sm:$0x1]  ;;  %s226_s27 = scalar_lea.vmem %s684_s0, %s484_s24  ;;  %s240_s30 = scalar_lea.vmem %s686_s2, %s636_s20  ;;  %vm328_vm6 = vcmp.eq.s32.totalorder %v649_v12, 2  ;;  %vm327_vm7 = vcmp.eq.s32.totalorder %v649_v12, 1  ;;  %vm326_vm8 = vcmp.eq.s32.totalorder %v649_v12, 0 }
  0x13   : > { %vm284_vm2 = vcmp.ne.s32.totalorder %v250_v0, 255  ;;  %v249_v1 = vld [vmem:[%s226_s27] sm:$0xf]  ;;  %s488_s6 = sshll.u32 %s636_s20, 3 }
  0x14   : > { %v489_v3 = vsel %vm284_vm2, 1.0, %v585_v2  ;;  %v252_v4 = vsel %vm251_vm0, %v249_v1, -inf  ;;  %v540_v13 = vld [vmem:[%s233_s23] ss:$0 sm:$0xff]  ;;  %s248_s10 = scalar_lea.vmem %s687_s3, %s488_s6 }
  0x15   : > { %v293_v5 = vsel %vm292_vm1, %v489_v3, 0.0  ;;  %v253_v6 = vrot.slane %v252_v4, 4  ;;  %vm275_vm3 = vcmp.eq.s32.totalorder %v649_v12, %v540_v13 }
  0x16   : > { %294 = vadd.xlane.f32.xlu0 %v293_v5  ;;  %v276_v17 = vsel %vm275_vm3, %v249_v1, 0.0 }
  0x17   : > { %v254_v7 = vmax.f32 %v252_v4, %v253_v6  ;;  %v277_v18 = vsel %vm251_vm0, %v276_v17, 0.0 }
  0x18   : > { %v278_v20 = vrot.slane %v277_v18, 4 }
  0x19   : > { %v255_v8 = vrot.slane %v254_v7, 2 }
  0x1a   : > { %v279_v24 = vadd.f32 %v278_v20, %v277_v18 }
  0x1b   : > { %v256_v10 = vmax.f32 %v254_v7, %v255_v8 }
  0x1c   : > { %v280_v27 = vrot.slane %v279_v24, 2 }
  0x1d   : > { %v257_v11 = vrot.slane %v256_v10, 1 }
  0x1e   : > { %v281_v30 = vadd.f32 %v280_v27, %v279_v24 }
  0x1f   : > { %v258_v14 = vmax.f32 %v256_v10, %v257_v11 }
  0x20   : > { %v282_v31 = vrot.slane %v281_v30, 1 }
  0x21   : > { %v259_v15 = vsub.f32 %v249_v1, %v258_v14 }
  0x22   : > { %v283_v34 = vadd.f32 %v282_v31, %v281_v30 }
  0x23   : > { %v260_v16 = vmul.f32 1.442695, %v259_v15 }
  0x25   : > { %541 = vpow2.f32 %v260_v16 }
  0x2b   : > { %v542_v19 = vpop.eup %541 }
  0x2c   : > { %v262_v21 = vsel %vm251_vm0, %v542_v19, 0.0 }
  0x2d   : > { %v263_v22 = vrot.slane %v262_v21, 4 }
  0x2f   : > { %v264_v23 = vadd.f32 %v263_v22, %v262_v21 }
  0x31   : > { %v265_v25 = vrot.slane %v264_v23, 2 }
  0x33   : > { %v266_v26 = vadd.f32 %v265_v25, %v264_v23 }
  0x35   : > { %v267_v28 = vrot.slane %v266_v26, 1 }
  0x37   : > { %v268_v29 = vadd.f32 %v267_v28, %v266_v26 }
  0x39   : > { %543 = vlog2.f32 %v268_v29 }
  0x3f   : > { %v544_v32 = vpop.eup %543 }
  0x40   : > { %v270_v33 = vmul.f32 0.6931472, %v544_v32 }
  0x42   : > { %v271_v35 = vadd.f32 %v270_v33, %v258_v14 }
  0x44   : > { %v285_v36 = vsub.f32 %v271_v35, %v283_v34 }
  0x46   : > { %v286_v37 = vsel %vm284_vm2, %v285_v36, 0.0 }
  0x47   : > { %vm288_vm4 = vcmp.gt.f32.partialorder %v286_v37, 0.35667494  ;;  %287 = vst [vmem:[%s240_s30] sm:$0x1] %v286_v37 }
  0x48   : > { %vm289_vm5 = vmand %vm284_vm2, %vm288_vm4 }
  0x49   : > { %v315_v38 = vsel %vm289_vm5, %v286_v37, 0.0  ;;  %v490_v39 = vsel %vm289_vm5, 1.0, %v585_v2 }
  0x4a   : > { %v316_v40 = vsel %vm292_vm1, %v315_v38, 0.0  ;;  %v305_v41 = vsel %vm292_vm1, %v490_v39, 0.0 }
  0x4b   : > { %317 = vadd.xlane.f32.xlu1 %v316_v40  ;;  %306 = vadd.xlane.f32.xlu0 %v305_v41 }
  0x89   : > { %v295_v42 = vpop.xlane.xlu0 %294 }
  0x8a   : > { %v296_v43 = vrot.slane %v295_v42, 4 }
  0x8c   : > { %v297_v44 = vadd.f32 %v296_v43, %v295_v42 }
  0x8e   : > { %v298_v45 = vrot.slane %v297_v44, 2 }
  0x90   : > { %v299_v46 = vadd.f32 %v298_v45, %v297_v44 }
  0x92   : > { %v300_v47 = vrot.slane %v299_v46, 1 }
  0x94   : > { %v301_v48 = vadd.f32 %v300_v47, %v299_v46 }
  0x96   : > { %493 = vpush %v301_v48 }
  0xbe   : > { %v318_v49 = vpop.xlane.xlu1 %317  ;;  %v307_v50 = vpop.xlane.xlu0 %306 }
  0xbf   : > { %v319_v51 = vrot.slane %v318_v49, 4  ;;  %v308_v52 = vrot.slane %v307_v50, 4 }
  0xc1   : > { %v320_v53 = vadd.f32 %v319_v51, %v318_v49  ;;  %v309_v54 = vadd.f32 %v308_v52, %v307_v50 }
  0xc3   : > { %v321_v55 = vrot.slane %v320_v53, 2  ;;  %v310_v56 = vrot.slane %v309_v54, 2 }
  0xc5   : > { %v322_v57 = vadd.f32 %v321_v55, %v320_v53  ;;  %v311_v58 = vadd.f32 %v310_v56, %v309_v54 }
  0xc7   : > { %v312_v59 = vrot.slane %v311_v58, 1  ;;  %v323_v60 = vrot.slane %v322_v57, 1  ;;  %s494_s4 = spop %493 }
  0xc8   : > { %v333_v2 = vstv %s494_s4 }
  0xc9   : > { %v313_v61 = vadd.f32 %v312_v59, %v311_v58  ;;  %v324_v62 = vadd.f32 %v323_v60, %v322_v57 }
  0xcb   : > { %495 = vpush %v313_v61 }
  0xcc   : > { %497 = vpush %v324_v62 }
  0xfc   : > { %s496_s5 = spop %495 }
  0xfd   : > { %v331_v63 = vstv %s496_s5  ;;  %s498_s7 = spop %497 }
  0xfe   : > { %v329_v0 = vstv %s498_s7 }
  0xff   : > { %v330_v1 = vsel %vm328_vm6, %v329_v0, 0.0 }
 0x100   : > { %v332_v3 = vsel %vm327_vm7, %v331_v63, %v330_v1 }
 0x101   : > { %v334_v4 = vsel %vm326_vm8, %v333_v2, %v332_v3 }
 0x102   : > { %335 = vst [vmem:[%s248_s10] sm:$0xff] %v334_v4 }
 0x103 PF: > { %s14_s16 = sadd.s32 1, %s583_s16   ;;  %s688_s12 = smov %s575_s14 }
 0x104   : > { %p11_p7 = scmp.ge.s32.totalorder %s14_s16, 6   ;;  %s689_s13 = smov %s579_s15 }
 0x105   : > { %s690_s14 = smov %s693_s17  ;;  %s691_s15 = smov %s697_s18 }
 0x106   :  { %13 = sbr.rel (!%p11_p7) target bundleno = 3 (0x3), region = 73 }

</bundles_post_ra>
